<compile_context>
chip_gen: v7x
topology: tpu7x:2x2x1
jax: 0.10.0
libtpu: 0.0.40
codegen_flags: <defaults>
</compile_context>

<pallas_src>
import functools

import numpy as np
import jax
import jax.numpy as jnp
from jax.experimental import pallas as pl
from jax.experimental.pallas import tpu as pltpu


def _vq_soft_euclid_kernel(x_ref, cb_ref, cc_ref, o_ref, *,
                           normalized_length, inv_temperature, approx_reciprocal):
    # x_ref : (C, TN)  channels-major tile of pixel feature columns (NCHW-flat).
    # cb_ref: (K, C)   codebook in the MXU operand dtype (resident across grid).
    # cc_ref: (K, 1)   precomputed f32 squared codebook norms.
    zf = x_ref[...].astype(jnp.float32)            # keep VPU/EUP math in f32 (v5e-safe)

    if normalized_length > 0:
        # x = normalized_length * F.normalize(x, dim=channels)   (eps = 1e-12)
        nrm2 = jnp.sum(zf * zf, axis=0, keepdims=True)                     # (1, TN)
        scale = normalized_length / jnp.maximum(jnp.sqrt(nrm2), 1e-12)     # (1, TN)
        zf = zf * scale
        zz = nrm2 * (scale * scale)   # exact ||z||^2 post-normalize (handles ~0 rows too)
    else:
        zz = jnp.sum(zf * zf, axis=0, keepdims=True)                        # (1, TN)

    cb = cb_ref[...]                                # (K, C)
    cc = cc_ref[...]                                # (K, 1) f32

    # cross[k, n] = <codebook_k, z_n>  — the single MXU matmul per tile.
    cross = jax.lax.dot_general(cb, zf.astype(cb.dtype), (((1,), (0,)), ((), ())),
                                preferred_element_type=jnp.float32)         # (K, TN)

    # d = ||z - c||  via  ||z||^2 - 2 z.c + ||c||^2  (clamped at 0).
    logits = jnp.sqrt(jnp.maximum(zz - 2.0 * cross + cc, 0.0)) * (-inv_temperature)

    # softmax over the codebook (sublane) axis.
    m = jnp.max(logits, axis=0, keepdims=True)
    p = jnp.exp(logits - m)
    l = jnp.sum(p, axis=0, keepdims=True)
    if approx_reciprocal:
        p = p * pl.reciprocal(l, approx=True)       # EUP slot — effectively free
    else:
        p = p / l

    # q[:, n] = codebook^T @ p[:, n]
    q = jax.lax.dot_general(cb, p.astype(cb.dtype), (((0,), (0,)), ((), ())),
                            preferred_element_type=jnp.float32)              # (C, TN)
    o_ref[...] = q.astype(o_ref.dtype)


def vq_soft_euclid(x_nchw, codebook, *, normalized_length, temperature,
                   tile_n=512, mxu_dtype=jnp.float32, approx_reciprocal=True):
    """VQSoftEuclid forward. Returns q in NCHW, same dtype as x_nchw.

    mxu_dtype=jnp.bfloat16 feeds the MXU bf16 operands (recommended on v6e/v7x);
    all VPU/EUP math stays f32.  For very small C/K (like the demo shapes) plain
    XLA would also be fine — the kernel is still correct, just lane-underutilized
    on the codebook operand.
    """
    B, C, H, W = x_nchw.shape
    K, Cf = codebook.shape
    assert Cf == C
    HW = H * W

    # Channels-major view: (B, C, H*W) is a free reshape of NCHW — no transpose,
    # no padding concat; the kernel reads/writes NCHW-flat data directly.
    x = x_nchw.reshape(B, C, HW)

    # Pixel-axis tile: multiple of 128 lanes, or the full extent if it fits.
    if HW <= tile_n:
        tn = HW
    else:
        tn = max((tile_n // 128) * 128, 128)
    num_j = pl.cdiv(HW, tn)   # partial last tile handled by Pallas block masking

    # Codebook-invariant precompute, once, wrapper-side (tiny XLA ops).
    cb_f32 = codebook.astype(jnp.float32)
    cc = jnp.sum(cb_f32 * cb_f32, axis=1, keepdims=True)     # (K, 1) f32 squared norms
    cb_mxu = cb_f32.astype(mxu_dtype)

    kernel = functools.partial(
        _vq_soft_euclid_kernel,
        normalized_length=float(normalized_length),
        inv_temperature=1.0 / float(temperature),
        approx_reciprocal=bool(approx_reciprocal),
    )

    # Explicit VMEM budget (re-derived for v7x's smaller VMEM): double-buffered
    # in/out tiles + resident codebook + generous f32 intermediate headroom.
    in_bytes = np.dtype(x.dtype).itemsize
    cb_bytes = np.dtype(mxu_dtype).itemsize
    need = (2 * C * tn * in_bytes              # input tiles (double-buffered)
            + 2 * C * tn * in_bytes            # output tiles (double-buffered)
            + 2 * (K * C * cb_bytes + K * 4)   # codebook + norms
            + 8 * max(K, C) * tn * 4)          # (K,TN)/(C,TN) f32 intermediates
    vmem_limit = int(min(max(4 * need, 16 * 2**20), 48 * 2**20))

    out = pl.pallas_call(
        kernel,
        out_shape=jax.ShapeDtypeStruct((B, C, HW), x.dtype),
        grid_spec=pltpu.PrefetchScalarGridSpec(
            num_scalar_prefetch=0,
            grid=(B, num_j),                    # >= 2 steps -> both v7x TCs used
            in_specs=[
                pl.BlockSpec((None, C, tn), lambda b, j: (b, 0, j)),
                # TODO(synk): for very large codebooks, single-buffer the resident
                # codebook (pipeline_mode=pl.Buffered(1)) and/or add an inner
                # K-tiling loop with an online-softmax accumulator.
                pl.BlockSpec((K, C), lambda b, j: (0, 0)),
                pl.BlockSpec((K, 1), lambda b, j: (0, 0)),
            ],
            out_specs=pl.BlockSpec((None, C, tn), lambda b, j: (b, 0, j)),
        ),
        compiler_params=pltpu.CompilerParams(
            dimension_semantics=("parallel", "parallel"),
            vmem_limit_bytes=vmem_limit,
        ),
    )(x, cb_mxu, cc)

    return out.reshape(B, C, H, W)


def vq_soft_euclid_ref(x, codebook, normalized_length, temperature):
    """Plain-JAX reference mirroring the PyTorch module."""
    B, C, H, W = x.shape
    if normalized_length > 0:
        nrm = jnp.sqrt(jnp.sum(x * x, axis=1, keepdims=True))
        x = normalized_length * x / jnp.maximum(nrm, 1e-12)
    z = jnp.transpose(x, (0, 2, 3, 1)).reshape(-1, C)
    d = jnp.linalg.norm(z[:, None, :] - codebook[None, :, :], axis=2)
    p = jax.nn.softmax(-d / temperature, axis=1)
    q = p @ codebook
    return q.reshape(B, H, W, C).transpose(0, 3, 1, 2)


if __name__ == "__main__":
    key = jax.random.PRNGKey(0)
    kx, kc = jax.random.split(key)

    B, C, H, W = 2, 4, 16, 16          # NCHW input
    K = 8                              # codebook_size
    normalized_length = 4.0
    temperature = 0.5                  # fixed value of the scheduled temperature

    x = jax.random.normal(kx, (B, C, H, W), dtype=jnp.float32)
    # nn.Parameter(torch.randn(codebook_size, feature_size)) -> deterministic init here
    codebook = jax.random.normal(kc, (K, C), dtype=jnp.float32)

    q_ref = vq_soft_euclid_ref(x, codebook, normalized_length, temperature)

    # Strict-numerics path: f32 MXU operands, exact softmax divide.
    q = vq_soft_euclid(x, codebook,
                       normalized_length=normalized_length,
                       temperature=temperature,
                       mxu_dtype=jnp.float32,
                       approx_reciprocal=False)
    q = jax.block_until_ready(q)
    assert q.shape == (B, C, H, W)
    assert q.dtype == jnp.float32
    assert jnp.allclose(q, q_ref, rtol=1e-4, atol=1e-4), "mismatch vs reference"

    # Production path for v6e/v7x: bf16 MXU operands + approximate reciprocal.
    # Looser check only (bf16 cross-terms cost a few bits of distance precision).
    q_fast = vq_soft_euclid(x, codebook,
                            normalized_length=normalized_length,
                            temperature=temperature,
                            mxu_dtype=jnp.bfloat16,
                            approx_reciprocal=True)
    q_fast = jax.block_until_ready(q_fast)
    assert q_fast.shape == (B, C, H, W)
    assert bool(jnp.all(jnp.isfinite(q_fast)))
    assert float(jnp.max(jnp.abs(q_fast.astype(jnp.float32) - q_ref))) < 1.0

    print("KERNEL_OK")
</pallas_src>

<mosaic_0001>
module attributes {stable_mosaic.version = 11 : i64} {
  func.func @_vq_soft_euclid_kernel(%arg0: i32, %arg1: i32, %arg2: memref<1x4x256xf32, #tpu.memory_space<vmem>>, %arg3: memref<8x4xf32, #tpu.memory_space<vmem>>, %arg4: memref<8x1xf32, #tpu.memory_space<vmem>>, %arg5: memref<1x4x256xf32, #tpu.memory_space<vmem>>) attributes {dimension_semantics = [#tpu.dimension_semantics<parallel>, #tpu.dimension_semantics<parallel>], iteration_bounds = array<i64: 2, 1>, scalar_prefetch = 0 : i64, scratch_operands = 0 : i64, tpu.core_type = #tpu.core_type<tc>, window_params = [{transform_indices = @transform_0, window_bounds = array<i64: 1, 4, 256>}, {pipeline_mode = #tpu.pipeline_mode<synchronous>, transform_indices = @transform_1, window_bounds = array<i64: 8, 4>}, {pipeline_mode = #tpu.pipeline_mode<synchronous>, transform_indices = @transform_2, window_bounds = array<i64: 8, 1>}, {transform_indices = @transform_3, window_bounds = array<i64: 1, 4, 256>}]} {
    %c0 = arith.constant 0 : index
    %c0_0 = arith.constant 0 : index
    %c0_1 = arith.constant 0 : index
    %0 = vector.load %arg2[%c0, %c0_0, %c0_1] : memref<1x4x256xf32, #tpu.memory_space<vmem>>, vector<1x4x256xf32>
    %1 = vector.shape_cast %0 : vector<1x4x256xf32> to vector<4x256xf32>
    %2 = arith.mulf %1, %1 : vector<4x256xf32>
    %cst = arith.constant dense<0.000000e+00> : vector<256xf32>
    %3 = vector.multi_reduction <add>, %2, %cst [0] : vector<4x256xf32> to vector<256xf32>
    %4 = vector.shape_cast %3 : vector<256xf32> to vector<1x256xf32>
    %5 = math.sqrt %4 : vector<1x256xf32>
    %cst_2 = arith.constant 9.99999996E-13 : f32
    %6 = vector.broadcast %cst_2 : f32 to vector<1x256xf32>
    %7 = arith.maximumf %5, %6 : vector<1x256xf32>
    %cst_3 = arith.constant 4.000000e+00 : f32
    %8 = vector.broadcast %cst_3 : f32 to vector<1x256xf32>
    %9 = arith.divf %8, %7 : vector<1x256xf32>
    %10 = vector.broadcast %9 : vector<1x256xf32> to vector<4x256xf32>
    %11 = arith.mulf %1, %10 : vector<4x256xf32>
    %12 = arith.mulf %9, %9 : vector<1x256xf32>
    %13 = arith.mulf %4, %12 : vector<1x256xf32>
    %c0_4 = arith.constant 0 : index
    %c0_5 = arith.constant 0 : index
    %14 = vector.load %arg3[%c0_4, %c0_5] : memref<8x4xf32, #tpu.memory_space<vmem>>, vector<8x4xf32>
    %c0_6 = arith.constant 0 : index
    %c0_7 = arith.constant 0 : index
    %15 = vector.load %arg4[%c0_6, %c0_7] : memref<8x1xf32, #tpu.memory_space<vmem>>, vector<8x1xf32>
    %cst_8 = arith.constant dense<0.000000e+00> : vector<8x256xf32>
    %16 = tpu.matmul %14, %11, %cst_8 {dimension_numbers = #tpu.dot_dimension_numbers<[1], [0], [0], [1], [0, 0, 1, 1], [], []>} : vector<8x4xf32>, vector<4x256xf32>, vector<8x256xf32> -> vector<8x256xf32>
    %cst_9 = arith.constant 2.000000e+00 : f32
    %17 = vector.broadcast %cst_9 : f32 to vector<8x256xf32>
    %18 = arith.mulf %17, %16 : vector<8x256xf32>
    %19 = vector.broadcast %13 : vector<1x256xf32> to vector<8x256xf32>
    %20 = arith.subf %19, %18 : vector<8x256xf32>
    %21 = vector.broadcast %15 : vector<8x1xf32> to vector<8x256xf32>
    %22 = arith.addf %20, %21 : vector<8x256xf32>
    %cst_10 = arith.constant 0.000000e+00 : f32
    %23 = vector.broadcast %cst_10 : f32 to vector<8x256xf32>
    %24 = arith.maximumf %22, %23 : vector<8x256xf32>
    %25 = math.sqrt %24 : vector<8x256xf32>
    %cst_11 = arith.constant -2.000000e+00 : f32
    %26 = vector.broadcast %cst_11 : f32 to vector<8x256xf32>
    %27 = arith.mulf %25, %26 : vector<8x256xf32>
    %cst_12 = arith.constant dense<0xFF800000> : vector<256xf32>
    %28 = vector.multi_reduction <maximumf>, %27, %cst_12 [0] : vector<8x256xf32> to vector<256xf32>
    %29 = vector.shape_cast %28 : vector<256xf32> to vector<1x256xf32>
    %30 = vector.broadcast %29 : vector<1x256xf32> to vector<8x256xf32>
    %31 = arith.subf %27, %30 : vector<8x256xf32>
    %32 = math.exp %31 : vector<8x256xf32>
    %cst_13 = arith.constant dense<0.000000e+00> : vector<256xf32>
    %33 = vector.multi_reduction <add>, %32, %cst_13 [0] : vector<8x256xf32> to vector<256xf32>
    %34 = vector.shape_cast %33 : vector<256xf32> to vector<1x256xf32>
    %35 = vector.broadcast %34 : vector<1x256xf32> to vector<8x256xf32>
    %36 = arith.divf %32, %35 : vector<8x256xf32>
    %cst_14 = arith.constant dense<0.000000e+00> : vector<4x256xf32>
    %37 = tpu.matmul %14, %36, %cst_14 {dimension_numbers = #tpu.dot_dimension_numbers<[0], [0], [1], [1], [0, 1, 1, 1], [], []>} : vector<8x4xf32>, vector<8x256xf32>, vector<4x256xf32> -> vector<4x256xf32>
    %c0_15 = arith.constant 0 : index
    %c0_16 = arith.constant 0 : index
    %c0_17 = arith.constant 0 : index
    %38 = vector.load %arg5[%c0_15, %c0_16, %c0_17] : memref<1x4x256xf32, #tpu.memory_space<vmem>>, vector<1x4x256xf32>
    %39 = vector.shape_cast %38 : vector<1x4x256xf32> to vector<4x256xf32>
    %40 = vector.shape_cast %37 : vector<4x256xf32> to vector<1x4x256xf32>
    tpu.vector_store %arg5[%c0_15, %c0_16, %c0_17], %40 {strides = array<i32>} : memref<1x4x256xf32, #tpu.memory_space<vmem>>, vector<1x4x256xf32>,
    return
  }
  func.func @transform_0(%arg0: i32, %arg1: i32) -> (i32, i32, i32) {
    %c0_i32 = arith.constant 0 : i32
    %c0_i32_0 = arith.constant 0 : i32
    return %arg0, %c0_i32, %arg1 : i32, i32, i32
  }
  func.func @transform_1(%arg0: i32, %arg1: i32) -> (i32, i32) {
    %c0_i32 = arith.constant 0 : i32
    %c0_i32_0 = arith.constant 0 : i32
    %c0_i32_1 = arith.constant 0 : i32
    return %c0_i32, %c0_i32_0 : i32, i32
  }
  func.func @transform_2(%arg0: i32, %arg1: i32) -> (i32, i32) {
    %c0_i32 = arith.constant 0 : i32
    %c0_i32_0 = arith.constant 0 : i32
    %c0_i32_1 = arith.constant 0 : i32
    return %c0_i32, %c0_i32_0 : i32, i32
  }
  func.func @transform_3(%arg0: i32, %arg1: i32) -> (i32, i32, i32) {
    %c0_i32 = arith.constant 0 : i32
    %c0_i32_0 = arith.constant 0 : i32
    return %arg0, %c0_i32, %arg1 : i32, i32, i32
  }
}

</mosaic_0001>

<bundles_post_ra>
// kernel: tpu_custom_call.1
= control target key start
LH: loop header
LB: loop body
LE: loop exit
PB: predicated region body
PF: predicated region fallthrough
CT: control target
= control target key end

     0   :  { %8 = vsyncpa [#allocation3], 0  ;;  %s922_s0 = inlined_call_operand.vmem [shape: f32[2,4,256], index: 0, kind: input, shape index: {}]   ;;  %s923_s1 = inlined_call_operand.vmem [shape: f32[8,4], index: 1, kind: input, shape index: {}]   ;;  %s924_s2 = inlined_call_operand.vmem [shape: f32[8,1], index: 2, kind: input, shape index: {}]   ;;  %s925_s3 = inlined_call_operand.hbm [shape: f32[2,4,256], index: 3, kind: output, shape index: {}]  }
   0x1   :  { %10 = vsyncpa [#allocation3 + $0x1], 0  ;;  %s800_s12 = smov 0   ;;  %s802_s13 = smov 0  }
   0x2   :  { %s804_s14 = smov 0   ;;  %s806_s15 = smov 0  }
   0x3   :  { %s808_s16 = smov 0   ;;  %s810_s17 = smov 0  }
   0x4 LB: > { %s600_s18 = sadd.s32 4294967295, %s775_s17   ;;  %s601_s19 = sadd.s32 4294967294, %s775_s17   ;;  %s775_s17 = sphi %s810_s17, %s16_s17   ;;  %s771_s16 = sphi %s808_s16, %s932_s16   ;;  %s767_s15 = sphi %s806_s15, %s931_s15   ;;  %s763_s14 = sphi %s804_s14, %s930_s14   ;;  %s759_s13 = sphi %s802_s13, %s929_s13   ;;  %s755_s12 = sphi %s800_s12, %s928_s12  }
   0x5   : > { %s28_s20 = sadd.s32 1, %s771_s16  ;;  %s107_s21 = sadd.s32 1, %s763_s14 }
   0x6   : > { %p30_p0 = scmp.ge.s32.totalorder %s28_s20, 2  ;;  %p117_p1 = scmp.ne.s32.totalorder %s763_s14, %s759_s13 }
   0x7   : > { %p118_p2 = scmp.eq.s32.totalorder %s600_s18, 1  ;;  %p123_p3 = scmp.ne.s32.totalorder %s759_s13, %s755_s12 }
   0x8   : > { %s934_s20 = smov (%p30_p0, %s28_s20), 0  ;;  %p124_p5 = scmp.eq.s32.totalorder %s601_s19, 1 }
   0x9   : > { %p840_p4 = por %p118_p2, %p117_p1  ;;  %s102_s23 = ssub.s32 %s771_s16, %s934_s20 }
   0xa   : > { %p604_p6 = scmp.ge.s32.totalorder %s775_s17, 1  ;;  %p105_p7 = scmp.eq.s32.totalorder %s102_s23, 0 }
   0xb   : > { %p847_p8 = por %p124_p5, %p123_p3  ;;  %p161_p9 = scmp.lt.s32.totalorder %s775_s17, 3 }
   0xc   : > { %s853_s25 = scalar_select %p105_p7, %s763_s14, %s107_s21  }
   0xd   : > { %p162_p10 = pnand %p604_p6, %p161_p9 }
   0xe   : > { %p190_p11 = scmp.lt.s32.totalorder (!%p162_p10), %s767_s15, 1  ;;  %v777_v0 = vmov (!%p162_p10), 0.0   ;;  %v778_v1 = vmov (!%p162_p10), 0   ;;  %v250_v2 = vld [vmem:[%s924_s2] sm:$0xff] (!%p162_p10)  ;;  %vm205_vm0 = vcmask (!%p162_p10), 1043456   ;;  %vm253_vm5 = vcmask (!%p162_p10), 31744  }
   0xf   : > { %165 = sbr.rel (%p162_p10) target bundleno = 603 (0x25b), region = 32  ;;  %325 = vmatprep.mubr.f32.mxu0 (!%p162_p10), %v777_v0  ;;  %676 = vset.pattern.permute.xlu0 (!%p162_p10), %v778_v1  ;;  %v249_v20 = vld [vmem:[%s923_s1] sm:$0xff] (!%p162_p10)  ;;  %vm427_vm10 = vcmask (!%p162_p10), 64512   ;;  %s186_s8 = sand.u32 (!%p162_p10), 1, %s759_s13  }
  0x10   : > { %338 = vperm.xlu0 (!%p162_p10), %676, %v250_v2   ;;  %495 = vmatprep.mubr.f32.mxu1 (!%p162_p10), %v777_v0  ;;  %s605_s9 = sshll.u32 (!%p162_p10), %s186_s8, 3  ;;  %s618_s10 = sshll.u32 (!%p162_p10), %s767_s15, 7 }
  0x11   : > { %s188_s11 = scalar_lea.vmem (!%p162_p10), [#allocation2], %s605_s9  ;;  %s875_s23 = scalar_lea.hbm (!%p162_p10), %s925_s3, %s618_s10 }
  0x12   : > { %s524_s18 = sshll.u32 (!%p162_p10), %s188_s11, 4  ;;  %s508_s26 = scalar_lea.sflag (!%p162_p10), [#allocation3], %s186_s8  ;;  %s877_s18 = int_to_ptr.vmem [resolvable:$true] %s524_s18 }
  0x13   : > { %s697_s27 = scalar_lea.vmem (!%p162_p10), %s877_s18, 128 }
  0x14   : > { %p698_p12 = scmp.ne.s32.totalorder (!%p162_p10), %s877_s18, %s697_s27 }
  0x16   : > { %s191_s28 = scalar_select %p190_p11, %s767_s15, 1 }
  0x17   : > { %p699_p13 = pnand %p698_p12, %p840_p4  ;;  %s779_s15 = smov [#allocation2]  }
  0x18   : > { %s617_s29 = sshll.u32 %s191_s28, 3  ;;  %s701_s28 = sshll.u32 %s779_s15, 4  ;;  %s702_s28 = int_to_ptr.vmem [resolvable:$false] %s701_s28 }
  0x19   : > { %s197_s5 = scalar_lea.vmem %s922_s0, %s617_s29  ;;  %p700_p0 = pneg %p699_p13 }
  0x1a   : > { %v200_v3 = vld [vmem:[%s197_s5] sm:$0xff]  ;;  %s703_s29 = scalar_lea.vmem %s702_s28, 256  ;;  %p704_p1 = scmp.lt.s32.totalorder %s877_s18, %s702_s28 }
  0x1b   : > { %v201_v4 = vmul.f32 %v200_v3, %v200_v3  ;;  %p705_p2 = scmp.lt.s32.totalorder %s703_s29, %s697_s27 }
  0x1d   : > { %v203_v5 = vcombine.high %v201_v4, %v201_v4  ;;  %v206_v6 = vsel %vm205_vm0, %v201_v4, 0.0  ;;  %p706_p3 = por %p705_p2, %p704_p1 }
  0x1e   : > { %v207_v7 = vrot.slane %v206_v6, 4 }
  0x1f   : > { %v213_v8 = vsel %vm205_vm0, %v203_v5, 0.0  ;;  %p707_p5 = pnand %p706_p3, %p700_p0 }
  0x20   : > { %v208_v9 = vadd.f32 %v207_v7, %v206_v6  ;;  %v214_v10 = vrot.slane %v213_v8, 4 }
  0x22   : > { %v209_v11 = vrot.slane %v208_v9, 2  ;;  %v215_v12 = vadd.f32 %v214_v10, %v213_v8 }
  0x24   : > { %v210_v13 = vadd.f32 %v209_v11, %v208_v9  ;;  %v216_v14 = vrot.slane %v215_v12, 2 }
  0x26   : > { %v211_v15 = vrot.slane %v210_v13, 1  ;;  %v217_v16 = vadd.f32 %v216_v14, %v215_v12 }
  0x28   : > { %v212_v17 = vadd.f32 %v211_v15, %v210_v13  ;;  %v218_v18 = vrot.slane %v217_v16, 1 }
  0x2a   : > { %v219_v19 = vadd.f32 %v218_v18, %v217_v16  ;;  %677 = vrsqrt.f32 %v212_v17  ;;  %vm222_vm1 = vcmp.eq.f32.partialorder %v212_v17, inf  ;;  %v225_v22 = vand.u32 2147483648, %v212_v17 }
  0x2b   : > { %vm224_vm2 = vcmp.eq.f32.partialorder %v212_v17, 0.0 }
  0x2c   : > { %679 = vrsqrt.f32 %v219_v19  ;;  %vm229_vm3 = vcmp.eq.f32.partialorder %v219_v19, inf  ;;  %v232_v25 = vand.u32 2147483648, %v219_v19  ;;  %vm231_vm4 = vcmp.eq.f32.partialorder %v219_v19, 0.0 }
  0x2e   : > { %395 = vxpose.xlu0.b32.start.end [1/1] (short) (narrow) %v249_v20, 8 }
  0x34   : > { %v678_v21 = vpop.eup %677 }
  0x35   : > { %v221_v23 = vmul.f32 %v678_v21, %v212_v17 }
  0x36   : > { %v680_v24 = vpop.eup %679 }
  0x37   : > { %v223_v26 = vsel %vm222_vm1, %v212_v17, %v221_v23  ;;  %v228_v27 = vmul.f32 %v680_v24, %v219_v19 }
  0x38   : > { %v226_v28 = vsel %vm224_vm2, %v225_v22, %v223_v26 }
  0x39   : > { %v230_v29 = vsel %vm229_vm3, %v219_v19, %v228_v27  ;;  %v234_v30 = vmax.f32 %v226_v28, 1e-12 }
  0x3a   : > { %v233_v31 = vsel %vm231_vm4, %v232_v25, %v230_v29 }
  0x3b   : > { %v235_v32 = vmax.f32 %v233_v31, 1e-12  ;;  %681 = vrcp.f32 %v234_v30 }
  0x3d   : > { %683 = vrcp.f32 %v235_v32 }
  0x45   : > { %v682_v33 = vpop.eup %681 }
  0x46   : > { %v237_v34 = vmul.f32 4.0, %v682_v33 }
  0x47   : > { %v684_v35 = vpop.eup %683 }
  0x48   : > { %v239_v36 = vmul.f32 4.0, %v684_v35  ;;  %v245_v37 = vmul.f32 %v237_v34, %v237_v34 }
  0x4a   : > { %v242_v38 = vcombine.low %v237_v34, %v239_v36  ;;  %v247_v39 = vmul.f32 %v245_v37, %v212_v17  ;;  %v246_v42 = vmul.f32 %v239_v36, %v239_v36 }
  0x4c   : > { %v244_v40 = vmul.f32 %v242_v38, %v200_v3  ;;  %v248_v44 = vmul.f32 %v246_v42, %v219_v19 }
  0x4e   : > { %v252_v41 = vcombine.high %v244_v40, %v244_v40 }
  0x50   : > { %608 = vmatprep.subr.msk.mxu0 %vm205_vm0, %v252_v41 }
  0x51   : > { %609 = vmatpush1.msk.msra.mxu0 %vm205_vm0, %v244_v40 }
  0x52   : > { %610 = vmatmul.mubr.msk.f32.vlgmr.msra.gmra.mrb[0].mxu0 %vm253_vm5, %v249_v20 }
  0x8f   : > { %v339_v48 = vpop.permute.xlu0 %338 }
  0xae   : > { %v411_v36 = vpop.trf.xlu0 }
 0x125   : > { %v327_v43 = vpop.f32.mrb[0].mxu0 }
 0x126   : > { %v332_v45 = vmul.f32 2.0, %v327_v43  ;;  %v329_v46 = vpop.f32.mrb[1].mxu0 }
 0x127   : > { %v333_v47 = vmul.f32 2.0, %v329_v46 }
 0x128   : > { %v334_v49 = vsub.f32 %v247_v39, %v332_v45 }
 0x129   : > { %v335_v50 = vsub.f32 %v248_v44, %v333_v47 }
 0x12a   : > { %v341_v51 = vadd.f32 %v339_v48, %v334_v49 }
 0x12b   : > { %v342_v52 = vadd.f32 %v339_v48, %v335_v50 }
 0x12c   : > { %v343_v53 = vmax.f32 %v341_v51, 0.0 }
 0x12d   : > { %v344_v54 = vmax.f32 %v342_v52, 0.0 }
 0x12e   : > { %685 = vrsqrt.f32 %v343_v53  ;;  %vm347_vm6 = vcmp.eq.f32.partialorder %v343_v53, inf  ;;  %v350_v58 = vand.u32 2147483648, %v343_v53  ;;  %vm349_vm7 = vcmp.eq.f32.partialorder %v343_v53, 0.0 }
 0x12f   : > { %687 = vrsqrt.f32 %v344_v54  ;;  %vm354_vm8 = vcmp.eq.f32.partialorder %v344_v54, inf  ;;  %v357_v61 = vand.u32 2147483648, %v344_v54  ;;  %vm356_vm9 = vcmp.eq.f32.partialorder %v344_v54, 0.0 }
 0x138   : > { %v686_v55 = vpop.eup %685 }
 0x139   : > { %v688_v56 = vpop.eup %687  ;;  %v346_v57 = vmul.f32 %v686_v55, %v343_v53 }
 0x13a   : > { %v353_v59 = vmul.f32 %v688_v56, %v344_v54 }
 0x13b   : > { %v348_v60 = vsel %vm347_vm6, %v343_v53, %v346_v57 }
 0x13c   : > { %v351_v62 = vsel %vm349_vm7, %v350_v58, %v348_v60  ;;  %v355_v63 = vsel %vm354_vm8, %v344_v54, %v353_v59 }
 0x13d   : > { %v358_v0 = vsel %vm356_vm9, %v357_v61, %v355_v63  ;;  %v359_v1 = vmul.f32 -2.0, %v351_v62 }
 0x13e   : > { %v360_v2 = vmul.f32 -2.0, %v358_v0 }
 0x13f   : > { %v361_v3 = vrot.slane %v359_v1, 4 }
 0x140   : > { %v367_v4 = vrot.slane %v360_v2, 4 }
 0x141   : > { %v362_v5 = vmax.f32 %v359_v1, %v361_v3 }
 0x142   : > { %v368_v6 = vmax.f32 %v360_v2, %v367_v4 }
 0x143   : > { %v363_v7 = vrot.slane %v362_v5, 2 }
 0x144   : > { %v369_v8 = vrot.slane %v368_v6, 2 }
 0x145   : > { %v364_v9 = vmax.f32 %v362_v5, %v363_v7 }
 0x146   : > { %v370_v10 = vmax.f32 %v368_v6, %v369_v8 }
 0x147   : > { %v365_v11 = vrot.slane %v364_v9, 1 }
 0x148   : > { %v371_v12 = vrot.slane %v370_v10, 1 }
 0x149   : > { %v366_v13 = vmax.f32 %v364_v9, %v365_v11 }
 0x14a   : > { %v372_v14 = vmax.f32 %v370_v10, %v371_v12 }
 0x14b   : > { %v373_v15 = vsub.f32 %v359_v1, %v366_v13 }
 0x14c   : > { %v374_v16 = vsub.f32 %v360_v2, %v372_v14 }
 0x14d   : > { %v375_v17 = vmul.f32 1.442695, %v373_v15 }
 0x14e   : > { %v377_v18 = vmul.f32 1.442695, %v374_v16 }
 0x14f   : > { %689 = vpow2.f32 %v375_v17 }
 0x150   : > { %691 = vpow2.f32 %v377_v18 }
 0x159   : > { %v690_v19 = vpop.eup %689 }
 0x15a   : > { %v692_v20 = vpop.eup %691  ;;  %v379_v21 = vrot.slane %v690_v19, 4 }
 0x15b   : > { %v385_v22 = vrot.slane %v692_v20, 4 }
 0x15c   : > { %v380_v23 = vadd.f32 %v690_v19, %v379_v21 }
 0x15d   : > { %v386_v24 = vadd.f32 %v692_v20, %v385_v22 }
 0x15e   : > { %v381_v25 = vrot.slane %v380_v23, 2 }
 0x15f   : > { %v387_v26 = vrot.slane %v386_v24, 2 }
 0x160   : > { %v382_v27 = vadd.f32 %v381_v25, %v380_v23 }
 0x161   : > { %v388_v28 = vadd.f32 %v387_v26, %v386_v24 }
 0x162   : > { %v383_v29 = vrot.slane %v382_v27, 1 }
 0x163   : > { %v389_v30 = vrot.slane %v388_v28, 1 }
 0x164   : > { %v384_v31 = vadd.f32 %v383_v29, %v382_v27 }
 0x165   : > { %v390_v32 = vadd.f32 %v389_v30, %v388_v28 }
 0x166   : > { %693 = vrcp.f32 %v384_v31 }
 0x167   : > { %695 = vrcp.f32 %v390_v32 }
 0x170   : > { %v694_v33 = vpop.eup %693 }
 0x171   : > { %v696_v34 = vpop.eup %695  ;;  %v392_v37 = vmul.f32 %v694_v33, %v690_v19 }
 0x172   : > { %v394_v35 = vmul.f32 %v696_v34, %v692_v20 }
 0x174   : > { %431 = vmatprep.subr.mxu1 %v394_v35 }
 0x175   : > { %432 = vmatpush1.msra.mxu1 %v392_v37 }
 0x176   : > { %611 = vmatmul.mubr.msk.f32.vlgmr.msra.gmra.mrb[0].mxu1 %vm427_vm10, %v411_v36 }
 0x249   : > { %v497_v38 = vpop.f32.mrb[0].mxu1 }
 0x24a   : > { %v499_v39 = vpop.f32.mrb[1].mxu1 }
 0x24b   : > { %v504_v40 = vcombine.low %v497_v38, %v499_v39 }
 0x24d   : > { %506 = vst [vmem:[%s188_s11] sm:$0xff] %v504_v40 }
 0x24e   : > { %710 = shalt.err (!%p707_p5)
}
 0x24f   : > { %s711_s30 = scalar_lea.hbm %s875_s23, 128  ;;  %s715_s6 = scalar_lea.hbm %s925_s3, 256 }
 0x250   : > { %p712_p6 = scmp.ne.s32.totalorder %s875_s23, %s711_s30  ;;  %p716_p10 = scmp.lt.u32.totalorder %s875_s23, %s925_s3 }
 0x251   : > { %p717_p11 = scmp.lt.u32.totalorder %s715_s6, %s711_s30  ;;  %p719_p13 = scmp.lt.u32.totalorder %s711_s30, %s875_s23 }
 0x252   : > { %p713_p7 = pnand %p712_p6, %p840_p4 }
 0x253   : > { %p718_p12 = por %p717_p11, %p716_p10 }
 0x254   : > { %p714_p9 = pneg %p713_p7 }
 0x255   : > { %p720_p0 = por %p719_p13, %p718_p12 }
 0x257   : > { %p721_p1 = pnand %p720_p0, %p714_p9 }
 0x259   : > { %724 = shalt.err (!%p721_p1)
}
 0x25a   : > { %619 = dma.vmem_to_hbm [thread:$0]  (%p840_p4), %s877_s18, 128, %s875_s23, %s508_s26  }
 0x25b PF: > { %p625_p2 = scmp.ge.s32.totalorder %s775_s17, 2  ;;  %s536_s9 = sand.u32 1, %s755_s12  }
 0x25c   : > { %s537_s10 = scalar_lea.sflag [#allocation3], %s536_s9 }
 0x25d   : > { %p622_p3 = pnand %p625_p2, %p847_p8 }
 0x25f   : > { %750 = dma.done.wait (!%p622_p3), %s537_s10, 128  }
 0x260   : > { %752 = vsyncadd (!%p622_p3), %s537_s10, 4294967168  ;;  %s16_s17 = sadd.s32 1, %s775_s17   ;;  %s928_s12 = smov %s759_s13 }
 0x261   : > { %p13_p5 = scmp.ge.s32.totalorder %s16_s17, 4   ;;  %s929_s13 = smov %s763_s14 }
 0x262   : > { %s930_s14 = smov %s853_s25  ;;  %s931_s15 = smov %s771_s16 }
 0x263   : > { %s932_s16 = smov %s934_s20  ;;  %15 = sbr.rel (!%p13_p5) target bundleno = 4 (0x4), region = 67 }
 0x26a   :  { %542 = vsyncpa [#allocation3], 1 }
 0x26b   :  { %544 = vsyncpa [#allocation3 + $0x1], 1 }

</bundles_post_ra>
